<compile_context>
chip_gen: v6e
topology: v6e:2x2x1
jax: 0.10.0
libtpu: 0.0.40
codegen_flags: <defaults>
</compile_context>

<pallas_src>
import jax
import jax.numpy as jnp
from jax.experimental import pallas as pl
from jax.experimental.pallas import tpu as pltpu


def _mlp_softmax_kernel(x_ref, w1_ref, b1_ref, w2_ref, b2_ref, w3_ref, b3_ref, o_ref):
    x = x_ref[...]  # (4, TILE_B) float32

    # Linear(4, 32) + ReLU        : (32,4) @ (4,TB) + (32,1)
    h1 = jnp.dot(w1_ref[...], x, preferred_element_type=jnp.float32) + b1_ref[...]
    h1 = jnp.maximum(h1, 0.0)

    # Linear(32, 32) + ReLU       : (32,32) @ (32,TB) + (32,1)
    h2 = jnp.dot(w2_ref[...], h1, preferred_element_type=jnp.float32) + b2_ref[...]
    h2 = jnp.maximum(h2, 0.0)

    # Linear(32, 4)               : (4,32) @ (32,TB) + (4,1)
    logits = jnp.dot(w3_ref[...], h2, preferred_element_type=jnp.float32) + b3_ref[...]

    # Softmax over the feature axis (axis 0 in the transposed layout).
    m = jnp.max(logits, axis=0, keepdims=True)        # (1, TB) sublane reduce (XLU)
    e = jnp.exp(logits - m)                           # EUP
    denom = jnp.sum(e, axis=0, keepdims=True)         # (1, TB)
    # EUP approximate reciprocal + one Newton refinement: r <- r * (2 - d*r)
    r = pl.reciprocal(denom, approx=True)
    r = r * (2.0 - denom * r)
    o_ref[...] = (e * r).astype(o_ref.dtype)


def generator_forward(x, params, tile_b=1024):
    """x: (B, 4) float32 -> (B, 4) float32 (softmax probabilities)."""
    w1, b1, w2, b2, w3, b3 = params
    B = x.shape[0]

    # Batch sits on the lane axis -> tile must be a multiple of 128.
    tb = min(tile_b, max(128, ((B + 127) // 128) * 128))
    b_padded = ((B + tb - 1) // tb) * tb
    grid = (b_padded // tb,)

    # Layout plumbing in the wrapper: (B,4) -> (4, B_padded). Padding columns
    # produce valid (discarded) softmax outputs; per-column softmax is safe.
    xt = jnp.zeros((4, b_padded), jnp.float32).at[:, :B].set(x.T)

    # Resident (constant across the grid) full-array specs for weights/biases.
    resident = lambda shape: pl.BlockSpec(shape, lambda i: (0, 0))

    out_t = pl.pallas_call(
        _mlp_softmax_kernel,
        out_shape=jax.ShapeDtypeStruct((4, b_padded), jnp.float32),
        grid=grid,
        in_specs=[
            pl.BlockSpec((4, tb), lambda i: (0, i)),   # x tile, auto-pipelined
            resident(w1.shape),
            resident(b1.shape),
            resident(w2.shape),
            resident(b2.shape),
            resident(w3.shape),
            resident(b3.shape),
        ],
        out_specs=pl.BlockSpec((4, tb), lambda i: (0, i)),
        compiler_params=pltpu.CompilerParams(
            dimension_semantics=("parallel",),
            vmem_limit_bytes=32 << 20,
        ),
    )(xt, w1, b1, w2, b2, w3, b3)

    return out_t[:, :B].T


def init_params(key):
    """Deterministic synthetic init matching the PyTorch layer shapes.

    Weights are kept in PyTorch's native (out_features, in_features)
    orientation; biases are (out_features, 1) columns for lane-broadcast.
    """
    k1, k2, k3, k4, k5, k6 = jax.random.split(key, 6)
    w1 = jax.random.uniform(k1, (32, 4), jnp.float32, -0.5, 0.5)
    b1 = jax.random.uniform(k2, (32, 1), jnp.float32, -0.5, 0.5)
    w2 = jax.random.uniform(k3, (32, 32), jnp.float32, -0.177, 0.177)
    b2 = jax.random.uniform(k4, (32, 1), jnp.float32, -0.177, 0.177)
    w3 = jax.random.uniform(k5, (4, 32), jnp.float32, -0.177, 0.177)
    b3 = jax.random.uniform(k6, (4, 1), jnp.float32, -0.177, 0.177)
    return (w1, b1, w2, b2, w3, b3)


def reference_forward(x, params):
    w1, b1, w2, b2, w3, b3 = params
    h1 = jnp.maximum(x @ w1.T + b1.T, 0.0)
    h2 = jnp.maximum(h1 @ w2.T + b2.T, 0.0)
    logits = h2 @ w3.T + b3.T
    return jax.nn.softmax(logits, axis=-1)


if __name__ == "__main__":
    key = jax.random.PRNGKey(0)
    kx, kp, kx2 = jax.random.split(key, 3)
    params = init_params(kp)

    # Small batch (single grid step, padded to one 128-lane tile).
    B = 8
    x = jax.random.normal(kx, (B, 4), jnp.float32)
    out = jax.block_until_ready(generator_forward(x, params))
    ref = reference_forward(x, params)
    assert out.shape == (B, 4)
    assert jnp.allclose(out, ref, atol=1e-5, rtol=1e-5), "mismatch vs reference (small B)"
    assert jnp.allclose(jnp.sum(out, axis=-1), jnp.ones((B,)), atol=1e-5)

    # Larger, non-tile-aligned batch (exercises multi-step grid + tail padding).
    B2 = 1000
    x2 = jax.random.normal(kx2, (B2, 4), jnp.float32)
    out2 = jax.block_until_ready(generator_forward(x2, params, tile_b=256))
    ref2 = reference_forward(x2, params)
    assert out2.shape == (B2, 4)
    assert jnp.allclose(out2, ref2, atol=1e-5, rtol=1e-5), "mismatch vs reference (large B)"
    assert jnp.allclose(jnp.sum(out2, axis=-1), jnp.ones((B2,)), atol=1e-5)

    print("KERNEL_OK")
</pallas_src>

<mosaic_0001>
module attributes {stable_mosaic.version = 11 : i64} {
  func.func @_mlp_softmax_kernel(%arg0: i32, %arg1: memref<4x128xf32, #tpu.memory_space<vmem>>, %arg2: memref<32x4xf32, #tpu.memory_space<vmem>>, %arg3: memref<32x1xf32, #tpu.memory_space<vmem>>, %arg4: memref<32x32xf32, #tpu.memory_space<vmem>>, %arg5: memref<32x1xf32, #tpu.memory_space<vmem>>, %arg6: memref<4x32xf32, #tpu.memory_space<vmem>>, %arg7: memref<4x1xf32, #tpu.memory_space<vmem>>, %arg8: memref<4x128xf32, #tpu.memory_space<vmem>>) attributes {dimension_semantics = [#tpu.dimension_semantics<parallel>], iteration_bounds = array<i64: 1>, scalar_prefetch = 0 : i64, scratch_operands = 0 : i64, tpu.core_type = #tpu.core_type<tc>, window_params = [{transform_indices = @transform_0, window_bounds = array<i64: 4, 128>}, {pipeline_mode = #tpu.pipeline_mode<synchronous>, transform_indices = @transform_1, window_bounds = array<i64: 32, 4>}, {pipeline_mode = #tpu.pipeline_mode<synchronous>, transform_indices = @transform_2, window_bounds = array<i64: 32, 1>}, {pipeline_mode = #tpu.pipeline_mode<synchronous>, transform_indices = @transform_3, window_bounds = array<i64: 32, 32>}, {pipeline_mode = #tpu.pipeline_mode<synchronous>, transform_indices = @transform_4, window_bounds = array<i64: 32, 1>}, {pipeline_mode = #tpu.pipeline_mode<synchronous>, transform_indices = @transform_5, window_bounds = array<i64: 4, 32>}, {pipeline_mode = #tpu.pipeline_mode<synchronous>, transform_indices = @transform_6, window_bounds = array<i64: 4, 1>}, {transform_indices = @transform_7, window_bounds = array<i64: 4, 128>}]} {
    %c0 = arith.constant 0 : index
    %c0_0 = arith.constant 0 : index
    %0 = vector.load %arg1[%c0, %c0_0] : memref<4x128xf32, #tpu.memory_space<vmem>>, vector<4x128xf32>
    %c0_1 = arith.constant 0 : index
    %c0_2 = arith.constant 0 : index
    %1 = vector.load %arg2[%c0_1, %c0_2] : memref<32x4xf32, #tpu.memory_space<vmem>>, vector<32x4xf32>
    %cst = arith.constant dense<0.000000e+00> : vector<32x128xf32>
    %2 = tpu.matmul %1, %0, %cst {dimension_numbers = #tpu.dot_dimension_numbers<[1], [0], [0], [1], [0, 0, 1, 1], [], []>} : vector<32x4xf32>, vector<4x128xf32>, vector<32x128xf32> -> vector<32x128xf32>
    %c0_3 = arith.constant 0 : index
    %c0_4 = arith.constant 0 : index
    %3 = vector.load %arg3[%c0_3, %c0_4] : memref<32x1xf32, #tpu.memory_space<vmem>>, vector<32x1xf32>
    %4 = vector.broadcast %3 : vector<32x1xf32> to vector<32x128xf32>
    %5 = arith.addf %2, %4 : vector<32x128xf32>
    %cst_5 = arith.constant 0.000000e+00 : f32
    %6 = vector.broadcast %cst_5 : f32 to vector<32x128xf32>
    %7 = arith.maximumf %5, %6 : vector<32x128xf32>
    %c0_6 = arith.constant 0 : index
    %c0_7 = arith.constant 0 : index
    %8 = vector.load %arg4[%c0_6, %c0_7] : memref<32x32xf32, #tpu.memory_space<vmem>>, vector<32x32xf32>
    %cst_8 = arith.constant dense<0.000000e+00> : vector<32x128xf32>
    %9 = tpu.matmul %8, %7, %cst_8 {dimension_numbers = #tpu.dot_dimension_numbers<[1], [0], [0], [1], [0, 0, 1, 1], [], []>} : vector<32x32xf32>, vector<32x128xf32>, vector<32x128xf32> -> vector<32x128xf32>
    %c0_9 = arith.constant 0 : index
    %c0_10 = arith.constant 0 : index
    %10 = vector.load %arg5[%c0_9, %c0_10] : memref<32x1xf32, #tpu.memory_space<vmem>>, vector<32x1xf32>
    %11 = vector.broadcast %10 : vector<32x1xf32> to vector<32x128xf32>
    %12 = arith.addf %9, %11 : vector<32x128xf32>
    %cst_11 = arith.constant 0.000000e+00 : f32
    %13 = vector.broadcast %cst_11 : f32 to vector<32x128xf32>
    %14 = arith.maximumf %12, %13 : vector<32x128xf32>
    %c0_12 = arith.constant 0 : index
    %c0_13 = arith.constant 0 : index
    %15 = vector.load %arg6[%c0_12, %c0_13] : memref<4x32xf32, #tpu.memory_space<vmem>>, vector<4x32xf32>
    %cst_14 = arith.constant dense<0.000000e+00> : vector<4x128xf32>
    %16 = tpu.matmul %15, %14, %cst_14 {dimension_numbers = #tpu.dot_dimension_numbers<[1], [0], [0], [1], [0, 0, 1, 1], [], []>} : vector<4x32xf32>, vector<32x128xf32>, vector<4x128xf32> -> vector<4x128xf32>
    %c0_15 = arith.constant 0 : index
    %c0_16 = arith.constant 0 : index
    %17 = vector.load %arg7[%c0_15, %c0_16] : memref<4x1xf32, #tpu.memory_space<vmem>>, vector<4x1xf32>
    %18 = vector.broadcast %17 : vector<4x1xf32> to vector<4x128xf32>
    %19 = arith.addf %16, %18 : vector<4x128xf32>
    %cst_17 = arith.constant dense<0xFF800000> : vector<128xf32>
    %20 = vector.multi_reduction <maximumf>, %19, %cst_17 [0] : vector<4x128xf32> to vector<128xf32>
    %21 = vector.shape_cast %20 : vector<128xf32> to vector<1x128xf32>
    %22 = vector.broadcast %21 : vector<1x128xf32> to vector<4x128xf32>
    %23 = arith.subf %19, %22 : vector<4x128xf32>
    %24 = math.exp %23 : vector<4x128xf32>
    %cst_18 = arith.constant dense<0.000000e+00> : vector<128xf32>
    %25 = vector.multi_reduction <add>, %24, %cst_18 [0] : vector<4x128xf32> to vector<128xf32>
    %26 = vector.shape_cast %25 : vector<128xf32> to vector<1x128xf32>
    %27 = tpu.reciprocal %26 {approx = true} : vector<1x128xf32> -> vector<1x128xf32>
    %28 = arith.mulf %26, %27 : vector<1x128xf32>
    %cst_19 = arith.constant 2.000000e+00 : f32
    %29 = vector.broadcast %cst_19 : f32 to vector<1x128xf32>
    %30 = arith.subf %29, %28 : vector<1x128xf32>
    %31 = arith.mulf %27, %30 : vector<1x128xf32>
    %32 = vector.broadcast %31 : vector<1x128xf32> to vector<4x128xf32>
    %33 = arith.mulf %24, %32 : vector<4x128xf32>
    %c0_20 = arith.constant 0 : index
    %c0_21 = arith.constant 0 : index
    %34 = vector.load %arg8[%c0_20, %c0_21] : memref<4x128xf32, #tpu.memory_space<vmem>>, vector<4x128xf32>
    tpu.vector_store %arg8[%c0_20, %c0_21], %33 {strides = array<i32>} : memref<4x128xf32, #tpu.memory_space<vmem>>, vector<4x128xf32>,
    return
  }
  func.func @transform_0(%arg0: i32) -> (i32, i32) {
    %c0_i32 = arith.constant 0 : i32
    %c0_i32_0 = arith.constant 0 : i32
    return %c0_i32, %arg0 : i32, i32
  }
  func.func @transform_1(%arg0: i32) -> (i32, i32) {
    %c0_i32 = arith.constant 0 : i32
    %c0_i32_0 = arith.constant 0 : i32
    %c0_i32_1 = arith.constant 0 : i32
    return %c0_i32, %c0_i32_0 : i32, i32
  }
  func.func @transform_2(%arg0: i32) -> (i32, i32) {
    %c0_i32 = arith.constant 0 : i32
    %c0_i32_0 = arith.constant 0 : i32
    %c0_i32_1 = arith.constant 0 : i32
    return %c0_i32, %c0_i32_0 : i32, i32
  }
  func.func @transform_3(%arg0: i32) -> (i32, i32) {
    %c0_i32 = arith.constant 0 : i32
    %c0_i32_0 = arith.constant 0 : i32
    %c0_i32_1 = arith.constant 0 : i32
    return %c0_i32, %c0_i32_0 : i32, i32
  }
  func.func @transform_4(%arg0: i32) -> (i32, i32) {
    %c0_i32 = arith.constant 0 : i32
    %c0_i32_0 = arith.constant 0 : i32
    %c0_i32_1 = arith.constant 0 : i32
    return %c0_i32, %c0_i32_0 : i32, i32
  }
  func.func @transform_5(%arg0: i32) -> (i32, i32) {
    %c0_i32 = arith.constant 0 : i32
    %c0_i32_0 = arith.constant 0 : i32
    %c0_i32_1 = arith.constant 0 : i32
    return %c0_i32, %c0_i32_0 : i32, i32
  }
  func.func @transform_6(%arg0: i32) -> (i32, i32) {
    %c0_i32 = arith.constant 0 : i32
    %c0_i32_0 = arith.constant 0 : i32
    %c0_i32_1 = arith.constant 0 : i32
    return %c0_i32, %c0_i32_0 : i32, i32
  }
  func.func @transform_7(%arg0: i32) -> (i32, i32) {
    %c0_i32 = arith.constant 0 : i32
    %c0_i32_0 = arith.constant 0 : i32
    return %c0_i32, %arg0 : i32, i32
  }
}

</mosaic_0001>

<bundles_post_ra>
// kernel: tpu_custom_call.1
= control target key start
LH: loop header
LB: loop body
LE: loop exit
PB: predicated region body
PF: predicated region fallthrough
CT: control target
= control target key end

     0   :  { %vm69_vm0 = vcmask 1043456   ;;  %vm56_vm1 = vcmask 31744   ;;  %v502_v5 = vmov 0   ;;  %s619_s0 = inlined_call_operand.vmem [shape: f32[4,128], index: 0, kind: input, shape index: {}]   ;;  %s620_s1 = inlined_call_operand.vmem [shape: f32[32,4], index: 1, kind: input, shape index: {}]   ;;  %s621_s2 = inlined_call_operand.vmem [shape: f32[32,1], index: 2, kind: input, shape index: {}]   ;;  %s622_s3 = inlined_call_operand.vmem [shape: f32[32,32], index: 3, kind: input, shape index: {}]   ;;  %s623_s4 = inlined_call_operand.vmem [shape: f32[32,1], index: 4, kind: input, shape index: {}]   ;;  %s624_s5 = inlined_call_operand.vmem [shape: f32[4,32], index: 5, kind: input, shape index: {}]   ;;  %s625_s6 = inlined_call_operand.vmem [shape: f32[4,1], index: 6, kind: input, shape index: {}]   ;;  %s626_s7 = inlined_call_operand.hbm [shape: f32[4,128], index: 7, kind: output, shape index: {}]  }
   0x1   :  { %v27_v0 = vld [vmem:[%s619_s0] sm:$0xf]  ;;  %v29_v2 = vld [vmem:[%s620_s1 + $0x8] sm:$0xff]  ;;  %v30_v3 = vld [vmem:[%s620_s1 + $0x10] sm:$0xff]  ;;  %474 = vset.pattern.permute.xlu0 %v502_v5  ;;  %475 = vset.pattern.permute.xlu1 %v502_v5 }
   0x2   :  { %v28_v1 = vld [vmem:[%s620_s1] sm:$0xff]  ;;  %437 = vmatprep.subr.msk.mxu0 %vm69_vm0, %v27_v0  ;;  %v35_v4 = vld [vmem:[%s621_s2 + $0x18] sm:$0xff]  ;;  %v33_v6 = vld [vmem:[%s621_s2 + $0x8] sm:$0xff] }
   0x3   :  { %439 = vmatprep.mubr.msk.f32.mxu0 %vm56_vm1, %v28_v1  ;;  %438 = vmatpush3.msk.msra.mxu0 %vm69_vm0, %v27_v0  ;;  %v31_v7 = vld [vmem:[%s620_s1 + $0x18] sm:$0xff]  ;;  %v34_v8 = vld [vmem:[%s621_s2 + $0x10] sm:$0xff] }
   0x4   :  { %440 = vmatmul.mubr.msk.f32.vlgmr.msra.gmra.mxu0 %vm56_vm1, %v29_v2  ;;  %53 = vperm.xlu0 %474, %v35_v4  }
   0x5   :  { %442 = vmatprep.mubr.msk.f32.mxu0 %vm56_vm1, %v30_v3 }
   0x6   :  { %12 = vsyncpa [#allocation3], 0  ;;  %43 = vperm.xlu1 %475, %v33_v6   ;;  %v32_v9 = vld [vmem:[%s621_s2] sm:$0xff]  ;;  %v169_v10 = vld [vmem:[%s623_s4 + $0x18] sm:$0xff]  ;;  %vm190_vm2 = vcmask 261120   ;;  %v503_v35 = vmov 0.0  }
   0x7   :  { %v168_v11 = vld [vmem:[%s623_s4 + $0x10] sm:$0xff]  ;;  %v167_v12 = vld [vmem:[%s623_s4 + $0x8] sm:$0xff]  ;;  %v166_v13 = vld [vmem:[%s623_s4] sm:$0xff]  ;;  %459 = vmatprep.subr.mxu0 %v503_v35  ;;  %vm504_vm3 = vmmov 0  }
   0x8   :  { %443 = vmatmul.mubr.msk.f32.gmra.mxu0 %vm56_vm1, %v31_v7  ;;  %48 = vperm.xlu0 %474, %v34_v8   ;;  %v293_v14 = vld [vmem:[%s625_s6] sm:$0xf]  ;;  %v163_v32 = vld [vmem:[%s622_s3 + $0x8] sm:$0xff]  ;;  %v164_v33 = vld [vmem:[%s622_s3 + $0x10] sm:$0xff] }
   0x9   :  { %v162_v15 = vld [vmem:[%s622_s3] sm:$0xff]  ;;  %v165_v34 = vld [vmem:[%s622_s3 + $0x18] sm:$0xff]  ;;  %467 = vmatprep.mubr.msk.f32.mxu0 %vm504_vm3, %v503_v35 }
   0xa   :  { %38 = vperm.xlu1 %475, %v32_v9   ;;  %453 = vmatprep.mubr.msk.f32.mxu1 %vm190_vm2, %v162_v15  ;;  %v292_v52 = vld [vmem:[%s624_s5] sm:$0xf]  ;;  %s505_s5 = smov [#allocation2]  }
   0xb   :  { %s401_s0 = sshll.u32 %s505_s5, 4  ;;  %s402_s0 = int_to_ptr.vmem [resolvable:$true] %s401_s0 }
   0xc   :  { %187 = vperm.xlu0 %474, %v169_v10   ;;  %s480_s10 = scalar_lea.vmem %s402_s0, 64  ;;  %p485_p1 = scmp.lt.s32.totalorder %s402_s0, %s402_s0 }
   0xd   :  { %p481_p0 = scmp.ne.s32.totalorder %s402_s0, %s480_s10  ;;  %p486_p2 = scmp.lt.s32.totalorder %s480_s10, %s480_s10 }
   0xe   :  { %182 = vperm.xlu1 %475, %v168_v11  }
   0xf   :  { %p487_p3 = por %p486_p2, %p485_p1 }
  0x10   :  { %177 = vperm.xlu0 %474, %v167_v12  }
  0x11   :  { %p488_p4 = pnand %p487_p3, %p481_p0 }
  0x12   :  { %172 = vperm.xlu1 %475, %v166_v13  }
  0x14   :  { %296 = vperm.xlu0 %474, %v293_v14  }
  0x7f   :  { %v54_v16 = vpop.permute.xlu0 %53 }
  0x81   :  { %v44_v18 = vpop.permute.xlu1 %43 }
  0x83   :  { %v49_v22 = vpop.permute.xlu0 %48 }
  0x85   :  { %v39_v27 = vpop.permute.xlu1 %38 }
  0x87   :  { %v188_v36 = vpop.permute.xlu0 %187 }
  0x89   :  { %v183_v38 = vpop.permute.xlu1 %182 }
  0x8b   :  { %v178_v42 = vpop.permute.xlu0 %177 }
  0x8d   :  { %v173_v47 = vpop.permute.xlu1 %172 }
  0x8f   :  { %v297_v53 = vpop.permute.xlu0 %296 }
  0xc4   :  { %v441_v17 = vpop.f32.mrf.mxu0 }
  0xc5   :  { %v145_v24 = vadd.f32 %v441_v17, %v44_v18 }
  0xc6   :  { %v139_v19 = vpop.f32.mrf.mxu0 }
  0xc7   :  { %v140_v28 = vadd.f32 %v139_v19, %v39_v27  ;;  %v159_v30 = vmax.f32 %v145_v24, 0.0 }
  0xc8   :  { %v444_v20 = vpop.f32.mrf.mxu0 }
  0xc9   :  { %v155_v21 = vadd.f32 %v444_v20, %v54_v16  ;;  %v158_v31 = vmax.f32 %v140_v28, 0.0 }
  0xca   :  { %v149_v23 = vpop.f32.mrf.mxu0 }
  0xcb   :  { %v161_v25 = vmax.f32 %v155_v21, 0.0  ;;  %v150_v26 = vadd.f32 %v149_v23, %v49_v22 }
  0xcd   :  { %v160_v29 = vmax.f32 %v150_v26, 0.0  ;;  %445 = vmatprep.subr.mxu1 %v161_v25 }
  0xce   :  { %446 = vmatpush3.msra.mxu1 %v161_v25 }
  0xcf   :  { %447 = vmatprep.subr.mxu1 %v160_v29 }
  0xd0   :  { %448 = vmatpush3.msra.mxu1 %v160_v29 }
  0xd1   :  { %449 = vmatprep.subr.mxu1 %v159_v30 }
  0xd2   :  { %450 = vmatpush3.msra.mxu1 %v159_v30 }
  0xd3   :  { %451 = vmatprep.subr.mxu1 %v158_v31 }
  0xd4   :  { %452 = vmatpush3.msra.mxu1 %v158_v31 }
  0xd5   :  { %454 = vmatmul.mubr.msk.f32.vlgmr.msra.gmra.mxu1 %vm190_vm2, %v163_v32 }
  0xd6   :  { %456 = vmatprep.mubr.msk.f32.mxu1 %vm190_vm2, %v164_v33 }
  0xd9   :  { %457 = vmatmul.mubr.msk.f32.gmra.mxu1 %vm190_vm2, %v165_v34 }
 0x195   :  { %v455_v37 = vpop.f32.mrf.mxu1 }
 0x196   :  { %v275_v44 = vadd.f32 %v455_v37, %v178_v42 }
 0x197   :  { %v269_v39 = vpop.f32.mrf.mxu1 }
 0x198   :  { %v270_v48 = vadd.f32 %v269_v39, %v173_v47  ;;  %v289_v50 = vmax.f32 %v275_v44, 0.0 }
 0x199   :  { %v458_v40 = vpop.f32.mrf.mxu1 }
 0x19a   :  { %v285_v41 = vadd.f32 %v458_v40, %v188_v36  ;;  %v288_v51 = vmax.f32 %v270_v48, 0.0 }
 0x19b   :  { %v279_v43 = vpop.f32.mrf.mxu1 }
 0x19c   :  { %v291_v45 = vmax.f32 %v285_v41, 0.0  ;;  %v280_v46 = vadd.f32 %v279_v43, %v183_v38 }
 0x19e   :  { %v290_v49 = vmax.f32 %v280_v46, 0.0  ;;  %460 = vmatpush3.msra.mxu0 %v291_v45 }
 0x19f   :  { %461 = vmatprep.subr.mxu0 %v503_v35 }
 0x1a0   :  { %462 = vmatpush3.msra.mxu0 %v290_v49 }
 0x1a1   :  { %463 = vmatprep.subr.mxu0 %v503_v35 }
 0x1a2   :  { %464 = vmatpush3.msra.mxu0 %v289_v50 }
 0x1a3   :  { %465 = vmatprep.subr.mxu0 %v503_v35 }
 0x1a4   :  { %466 = vmatpush3.msra.mxu0 %v288_v51 }
 0x1a5   :  { %468 = vmatmul.mubr.msk.f32.vlgmr.msra.gmra.mxu0 %vm190_vm2, %v292_v52 }
 0x265   :  { %v368_v54 = vpop.f32.mrf.mxu0 }
 0x266   :  { %v369_v55 = vadd.f32 %v368_v54, %v297_v53 }
 0x267   :  { %v469_v56 = vpop.f32.mrf.mxu0 }
 0x268   :  { %v372_v57 = vsel %vm69_vm0, %v369_v55, -inf }
 0x269   :  { %v373_v58 = vrot.slane %v372_v57, 4 }
 0x26b   :  { %v374_v59 = vmax.f32 %v372_v57, %v373_v58 }
 0x26d   :  { %v375_v60 = vrot.slane %v374_v59, 2 }
 0x26f   :  { %v376_v61 = vmax.f32 %v374_v59, %v375_v60 }
 0x271   :  { %v377_v62 = vrot.slane %v376_v61, 1 }
 0x273   :  { %v378_v63 = vmax.f32 %v376_v61, %v377_v62 }
 0x275   :  { %v379_v0 = vsub.f32 %v369_v55, %v378_v63 }
 0x277   :  { %v380_v1 = vmul.f32 1.442695, %v379_v0 }
 0x279   :  { %476 = vpow2.f32 %v380_v1 }
 0x286   :  { %v477_v2 = vpop.eup %476 }
 0x287   :  { %v382_v3 = vsel %vm69_vm0, %v477_v2, 0.0 }
 0x288   :  { %v383_v4 = vrot.slane %v382_v3, 4 }
 0x28a   :  { %v384_v5 = vadd.f32 %v383_v4, %v382_v3 }
 0x28c   :  { %v385_v6 = vrot.slane %v384_v5, 2 }
 0x28e   :  { %v386_v7 = vadd.f32 %v385_v6, %v384_v5 }
 0x290   :  { %v387_v8 = vrot.slane %v386_v7, 1 }
 0x292   :  { %v388_v9 = vadd.f32 %v387_v8, %v386_v7 }
 0x294   :  { %478 = vrcp.f32 %v388_v9 }
 0x2a1   :  { %v479_v10 = vpop.eup %478 }
 0x2a2   :  { %v390_v11 = vmul.f32 %v479_v10, %v388_v9 }
 0x2a4   :  { %v391_v12 = vsub.f32 2.0, %v390_v11 }
 0x2a6   :  { %v392_v13 = vmul.f32 %v479_v10, %v391_v12 }
 0x2a8   :  { %v393_v14 = vmul.f32 %v477_v2, %v392_v13 }
 0x2aa   :  { %394 = vst [vmem:[#allocation2] sm:$0xf] %v393_v14 }
 0x2ab   :  { %491 = shalt.err (!%p488_p4)
}
 0x2ac   :  { %404 = dma.vmem_to_hbm [thread:$0]  %s402_s0, 64, %s626_s7, [#allocation3]  }
 0x2ad   :  { %500 = dma.done.wait [#allocation3], 64  }
 0x2ae   :  { %501 = vsyncadd [#allocation3], 4294967232 }
 0x2af   :  { %408 = vsyncpa [#allocation3], 1 }

</bundles_post_ra>
